<compile_context>
chip_gen: v6e
topology: v6e:2x2x1
jax: 0.10.0
libtpu: 0.0.40
codegen_flags: <defaults>
</compile_context>

<pallas_src>
import functools

import jax
import jax.numpy as jnp
from jax.experimental import pallas as pl
from jax.experimental.pallas import tpu as pltpu


def _round_up(x, m):
    return ((x + m - 1) // m) * m


def _conv3x1_kernel(prev_ref, x_ref, next_ref, w_ref, b_ref, o_ref, *,
                    K, pad_l, pad_r, halo):
    # prev_ref: (1, halo, C_in)   rows just before this tile (clamped at l == 0)
    # x_ref   : (1, T, C_in)      this tile's rows
    # next_ref: (1, halo, C_in)   rows just after this tile (clamped at last tile)
    # w_ref   : (K*C_in, C_out)   fused tap-major weights
    # b_ref   : (1, C_out)
    # o_ref   : (1, T, C_out)
    l = pl.program_id(1)
    n_l = pl.num_programs(1)
    T = x_ref.shape[1]

    x = x_ref[0]                                            # (T, C_in)
    pieces = []
    if pad_l > 0:
        keep = (l > 0).astype(x.dtype)                      # left edge -> zeros
        pieces.append(prev_ref[0, halo - pad_l:, :] * keep)
    pieces.append(x)
    if pad_r > 0:
        keep = (l < n_l - 1).astype(x.dtype)                # right edge -> zeros
        pieces.append(next_ref[0, :pad_r, :] * keep)
    xp = jnp.concatenate(pieces, axis=0) if len(pieces) > 1 else x   # (T+K-1, C_in)

    # Fuse all K taps into a single MXU matmul with a K*C_in-deep contraction.
    if K > 1:
        taps = jnp.concatenate([xp[k:k + T, :] for k in range(K)], axis=1)
    else:
        taps = xp                                            # (T, K*C_in)
    acc = jnp.dot(taps, w_ref[...], preferred_element_type=jnp.float32)
    acc = jnp.maximum(acc + b_ref[...], 0.0)                 # bias + ReLU in f32
    o_ref[0] = acc.astype(o_ref.dtype)


def conv3x1(x, weight, bias, kernel_size=3, pad_type="both", tile_l=None):
    """x: (B, L, C_in); weight: (C_out, C_in, K) [PyTorch Conv1d layout]; bias: (C_out,)."""
    B, L, C_in = x.shape
    C_out, C_in_w, K = weight.shape
    assert K == kernel_size and C_in_w == C_in

    if pad_type == "left":
        pad_l, pad_r = K - 1, 0
    else:
        pad_l, pad_r = K // 2, (K - 1) // 2

    # Halo block height (multiple of 8 so the BlockSpec tiling rule is satisfied).
    halo = _round_up(max(pad_l, pad_r, 1), 8)

    # Pick TILE_L from a VMEM budget that is safe across v5e/v6e/v7x
    # (double-buffered input+output tiles plus the weight slab).
    itemsize = jnp.dtype(x.dtype).itemsize
    w_bytes = K * C_in * C_out * jnp.dtype(weight.dtype).itemsize
    if tile_l is None:
        budget = 12 * 1024 * 1024
        avail = max(budget - 2 * w_bytes, 1 << 20)
        per_row = 2 * (C_in + C_out) * itemsize            # in + out, double-buffered
        t = int(avail // per_row)
        t = min(max(t, 8), 1024)
        t -= t % 8
        tile_l = max(min(t, _round_up(L, 8)), halo, 8)
    assert tile_l % 8 == 0 and tile_l >= halo

    n_l = pl.cdiv(L, tile_l)
    L_pad = n_l * tile_l
    if L_pad != L:
        # Ragged tail only: the zero rows coincide with the conv's implicit
        # right padding, so valid outputs are unaffected; sliced off below.
        x = jnp.pad(x, ((0, 0), (0, L_pad - L), (0, 0)))

    # Fused weights: (C_out, C_in, K) -> (K, C_in, C_out) -> (K*C_in, C_out)
    w_fused = jnp.transpose(weight, (2, 1, 0)).reshape(K * C_in, C_out)
    b2 = bias.reshape(1, C_out)

    R = tile_l // halo                 # halo-sized blocks per L tile
    n_halo_blocks = L_pad // halo

    def prev_map(b, l):                # last `halo` rows of the previous tile
        return (b, jnp.maximum(l * R - 1, 0), 0)

    def next_map(b, l):                # first `halo` rows of the next tile
        return (b, jnp.minimum((l + 1) * R, n_halo_blocks - 1), 0)

    kernel = functools.partial(_conv3x1_kernel, K=K, pad_l=pad_l, pad_r=pad_r,
                               halo=halo)

    out = pl.pallas_call(
        kernel,
        out_shape=jax.ShapeDtypeStruct((B, L_pad, C_out), x.dtype),
        grid_spec=pltpu.PrefetchScalarGridSpec(
            num_scalar_prefetch=0,
            grid=(B, n_l),
            in_specs=[
                pl.BlockSpec((1, halo, C_in), prev_map),
                pl.BlockSpec((1, tile_l, C_in), lambda b, l: (b, l, 0)),
                pl.BlockSpec((1, halo, C_in), next_map),
                pl.BlockSpec((K * C_in, C_out), lambda b, l: (0, 0)),
                pl.BlockSpec((1, C_out), lambda b, l: (0, 0)),
            ],
            out_specs=pl.BlockSpec((1, tile_l, C_out), lambda b, l: (b, l, 0)),
        ),
        compiler_params=pltpu.CompilerParams(
            dimension_semantics=("parallel", "parallel"),
        ),
    )(x, x, x, w_fused, b2)

    return out[:, :L, :] if L_pad != L else out


def _reference(x, weight, bias, kernel_size=3, pad_type="both"):
    """Pure-JAX reference mirroring the PyTorch forward."""
    K = kernel_size
    if pad_type == "left":
        pad_l, pad_r = K - 1, 0
    else:
        pad_l, pad_r = K // 2, (K - 1) // 2
    x_ncl = jnp.transpose(x, (0, 2, 1))                       # (B, C_in, L)
    x_ncl = jnp.pad(x_ncl, ((0, 0), (0, 0), (pad_l, pad_r)))
    out = jax.lax.conv_general_dilated(
        x_ncl, weight, window_strides=(1,), padding="VALID",
        dimension_numbers=("NCH", "OIH", "NCH"),
    ) + bias[None, :, None]
    return jnp.maximum(jnp.transpose(out, (0, 2, 1)), 0.0)    # (B, L, C_out)


if __name__ == "__main__":
    key = jax.random.PRNGKey(0)
    kx, kw, kb, kx2 = jax.random.split(key, 4)

    # Primary small test matching the module defaults.
    B, L, C_in, C_out, K = 2, 16, 4, 8, 3
    x = jax.random.normal(kx, (B, L, C_in), dtype=jnp.float32)
    weight = jax.random.normal(kw, (C_out, C_in, K), dtype=jnp.float32) * 0.1
    bias = jax.random.normal(kb, (C_out,), dtype=jnp.float32) * 0.1

    out = jax.block_until_ready(
        conv3x1(x, weight, bias, kernel_size=K, pad_type="both"))
    ref = _reference(x, weight, bias, kernel_size=K, pad_type="both")
    assert out.shape == (B, L, C_out)
    assert jnp.allclose(out, ref, atol=1e-5, rtol=1e-5)

    # Multi-tile path (halo fetch, edge masking, ragged tail) with a forced small tile.
    L2 = 40
    x2 = jax.random.normal(kx2, (B, L2, C_in), dtype=jnp.float32)
    for pt in ("both", "left"):
        out2 = jax.block_until_ready(
            conv3x1(x2, weight, bias, kernel_size=K, pad_type=pt, tile_l=16))
        ref2 = _reference(x2, weight, bias, kernel_size=K, pad_type=pt)
        assert out2.shape == (B, L2, C_out)
        assert jnp.allclose(out2, ref2, atol=1e-5, rtol=1e-5)

    print("KERNEL_OK")
</pallas_src>

<mosaic_0001>
module attributes {stable_mosaic.version = 11 : i64} {
  func.func @_conv3x1_kernel(%arg0: i32, %arg1: i32, %arg2: memref<1x8x4xf32, #tpu.memory_space<vmem>>, %arg3: memref<1x16x4xf32, #tpu.memory_space<vmem>>, %arg4: memref<1x8x4xf32, #tpu.memory_space<vmem>>, %arg5: memref<12x8xf32, #tpu.memory_space<vmem>>, %arg6: memref<1x8xf32, #tpu.memory_space<vmem>>, %arg7: memref<1x16x8xf32, #tpu.memory_space<vmem>>) attributes {dimension_semantics = [#tpu.dimension_semantics<parallel>, #tpu.dimension_semantics<parallel>], iteration_bounds = array<i64: 2, 1>, scalar_prefetch = 0 : i64, scratch_operands = 0 : i64, tpu.core_type = #tpu.core_type<tc>, window_params = [{transform_indices = @transform_0, window_bounds = array<i64: 1, 8, 4>}, {transform_indices = @transform_1, window_bounds = array<i64: 1, 16, 4>}, {transform_indices = @transform_2, window_bounds = array<i64: 1, 8, 4>}, {pipeline_mode = #tpu.pipeline_mode<synchronous>, transform_indices = @transform_3, window_bounds = array<i64: 12, 8>}, {pipeline_mode = #tpu.pipeline_mode<synchronous>, transform_indices = @transform_4, window_bounds = array<i64: 1, 8>}, {transform_indices = @transform_5, window_bounds = array<i64: 1, 16, 8>}]} {
    %c0 = arith.constant 0 : index
    %c0_0 = arith.constant 0 : index
    %c0_1 = arith.constant 0 : index
    %0 = vector.load %arg3[%c0, %c0_0, %c0_1] : memref<1x16x4xf32, #tpu.memory_space<vmem>>, vector<1x16x4xf32>
    %1 = vector.shape_cast %0 : vector<1x16x4xf32> to vector<16x4xf32>
    %c0_i32 = arith.constant 0 : i32
    %2 = arith.cmpi sgt, %arg1, %c0_i32 : i32
    %3 = arith.extui %2 : i1 to i32
    %4 = arith.sitofp %3 : i32 to f32
    %c0_2 = arith.constant 0 : index
    %c7 = arith.constant 7 : index
    %c0_3 = arith.constant 0 : index
    %5 = vector.load %arg2[%c0_2, %c7, %c0_3] : memref<1x8x4xf32, #tpu.memory_space<vmem>>, vector<1x1x4xf32>
    %6 = vector.shape_cast %5 : vector<1x1x4xf32> to vector<1x4xf32>
    %7 = vector.broadcast %4 : f32 to vector<1x4xf32>
    %8 = arith.mulf %6, %7 : vector<1x4xf32>
    %c0_i32_4 = arith.constant 0 : i32
    %9 = arith.cmpi slt, %arg1, %c0_i32_4 : i32
    %10 = arith.extui %9 : i1 to i32
    %11 = arith.sitofp %10 : i32 to f32
    %c0_5 = arith.constant 0 : index
    %c0_6 = arith.constant 0 : index
    %c0_7 = arith.constant 0 : index
    %12 = vector.load %arg4[%c0_5, %c0_6, %c0_7] : memref<1x8x4xf32, #tpu.memory_space<vmem>>, vector<1x1x4xf32>
    %13 = vector.shape_cast %12 : vector<1x1x4xf32> to vector<1x4xf32>
    %14 = vector.broadcast %11 : f32 to vector<1x4xf32>
    %15 = arith.mulf %13, %14 : vector<1x4xf32>
    %16 = tpu.concatenate %8, %1, %15 in 0 : vector<1x4xf32>, vector<16x4xf32>, vector<1x4xf32> -> vector<18x4xf32>
    %17 = vector.extract_strided_slice %16 {offsets = [0, 0], sizes = [16, 4], strides = [1, 1]} : vector<18x4xf32> to vector<16x4xf32>
    %18 = vector.extract_strided_slice %16 {offsets = [1, 0], sizes = [16, 4], strides = [1, 1]} : vector<18x4xf32> to vector<16x4xf32>
    %19 = vector.extract_strided_slice %16 {offsets = [2, 0], sizes = [16, 4], strides = [1, 1]} : vector<18x4xf32> to vector<16x4xf32>
    %20 = tpu.concatenate %17, %18, %19 in 1 : vector<16x4xf32>, vector<16x4xf32>, vector<16x4xf32> -> vector<16x12xf32>
    %c0_8 = arith.constant 0 : index
    %c0_9 = arith.constant 0 : index
    %21 = vector.load %arg5[%c0_8, %c0_9] : memref<12x8xf32, #tpu.memory_space<vmem>>, vector<12x8xf32>
    %cst = arith.constant dense<0.000000e+00> : vector<16x8xf32>
    %22 = tpu.matmul %20, %21, %cst {dimension_numbers = #tpu.dot_dimension_numbers<[1], [0], [0], [1], [0, 0, 1, 1], [], []>} : vector<16x12xf32>, vector<12x8xf32>, vector<16x8xf32> -> vector<16x8xf32>
    %c0_10 = arith.constant 0 : index
    %c0_11 = arith.constant 0 : index
    %23 = vector.load %arg6[%c0_10, %c0_11] : memref<1x8xf32, #tpu.memory_space<vmem>>, vector<1x8xf32>
    %24 = vector.broadcast %23 : vector<1x8xf32> to vector<16x8xf32>
    %25 = arith.addf %22, %24 : vector<16x8xf32>
    %cst_12 = arith.constant 0.000000e+00 : f32
    %26 = vector.broadcast %cst_12 : f32 to vector<16x8xf32>
    %27 = arith.maximumf %25, %26 : vector<16x8xf32>
    %c0_13 = arith.constant 0 : index
    %c0_14 = arith.constant 0 : index
    %c0_15 = arith.constant 0 : index
    %28 = vector.load %arg7[%c0_13, %c0_14, %c0_15] : memref<1x16x8xf32, #tpu.memory_space<vmem>>, vector<1x16x8xf32>
    %29 = vector.shape_cast %28 : vector<1x16x8xf32> to vector<16x8xf32>
    %30 = vector.shape_cast %27 : vector<16x8xf32> to vector<1x16x8xf32>
    tpu.vector_store %arg7[%c0_13, %c0_14, %c0_15], %30 {strides = array<i32>} : memref<1x16x8xf32, #tpu.memory_space<vmem>>, vector<1x16x8xf32>,
    return
  }
  func.func @transform_0(%arg0: i32, %arg1: i32) -> (i32, i32, i32) {
    %c2_i32 = arith.constant 2 : i32
    %0 = arith.muli %arg1, %c2_i32 : i32
    %c1_i32 = arith.constant 1 : i32
    %1 = arith.subi %0, %c1_i32 : i32
    %c0_i32 = arith.constant 0 : i32
    %2 = arith.maxsi %1, %c0_i32 : i32
    %c0_i32_0 = arith.constant 0 : i32
    %c0_i32_1 = arith.constant 0 : i32
    return %arg0, %2, %c0_i32_0 : i32, i32, i32
  }
  func.func @transform_1(%arg0: i32, %arg1: i32) -> (i32, i32, i32) {
    %c0_i32 = arith.constant 0 : i32
    %c0_i32_0 = arith.constant 0 : i32
    return %arg0, %arg1, %c0_i32 : i32, i32, i32
  }
  func.func @transform_2(%arg0: i32, %arg1: i32) -> (i32, i32, i32) {
    %c1_i32 = arith.constant 1 : i32
    %0 = arith.addi %arg1, %c1_i32 : i32
    %c2_i32 = arith.constant 2 : i32
    %1 = arith.muli %0, %c2_i32 : i32
    %c1_i32_0 = arith.constant 1 : i32
    %2 = arith.minsi %1, %c1_i32_0 : i32
    %c0_i32 = arith.constant 0 : i32
    %c0_i32_1 = arith.constant 0 : i32
    return %arg0, %2, %c0_i32 : i32, i32, i32
  }
  func.func @transform_3(%arg0: i32, %arg1: i32) -> (i32, i32) {
    %c0_i32 = arith.constant 0 : i32
    %c0_i32_0 = arith.constant 0 : i32
    %c0_i32_1 = arith.constant 0 : i32
    return %c0_i32, %c0_i32_0 : i32, i32
  }
  func.func @transform_4(%arg0: i32, %arg1: i32) -> (i32, i32) {
    %c0_i32 = arith.constant 0 : i32
    %c0_i32_0 = arith.constant 0 : i32
    %c0_i32_1 = arith.constant 0 : i32
    return %c0_i32, %c0_i32_0 : i32, i32
  }
  func.func @transform_5(%arg0: i32, %arg1: i32) -> (i32, i32, i32) {
    %c0_i32 = arith.constant 0 : i32
    %c0_i32_0 = arith.constant 0 : i32
    return %arg0, %arg1, %c0_i32 : i32, i32, i32
  }
}

</mosaic_0001>

<bundles_post_ra>
// kernel: tpu_custom_call.1
= control target key start
LH: loop header
LB: loop body
LE: loop exit
PB: predicated region body
PF: predicated region fallthrough
CT: control target
= control target key end

     0   :  { %s782_s18 = smov 0   ;;  %s784_s19 = smov 0   ;;  %s847_s0 = inlined_call_operand.vmem [shape: f32[2,16,4], index: 0, kind: input, shape index: {}]   ;;  %s848_s1 = inlined_call_operand.vmem [shape: f32[2,16,4], index: 1, kind: input, shape index: {}]   ;;  %s849_s2 = inlined_call_operand.vmem [shape: f32[2,16,4], index: 2, kind: input, shape index: {}]   ;;  %s850_s3 = inlined_call_operand.vmem [shape: f32[12,8], index: 3, kind: input, shape index: {}]   ;;  %s851_s4 = inlined_call_operand.vmem [shape: f32[1,8], index: 4, kind: input, shape index: {}]   ;;  %s852_s5 = inlined_call_operand.vmem [shape: f32[2,16,8], index: 5, kind: output, shape index: {}]  }
   0x1   :  { %s786_s20 = smov 0  }
   0x2 LB: > { %s27_s21 = sadd.s32 1, %s744_s19  ;;  %p668_p0 = scmp.ge.s32.totalorder %s748_s20, 1  ;;  %s748_s20 = sphi %s786_s20, %s15_s20   ;;  %s744_s19 = sphi %s784_s19, %s854_s19   ;;  %s740_s18 = sphi %s782_s18, %s853_s18  }
   0x3   : > { %p29_p1 = scmp.ge.s32.totalorder %s27_s21, 2  ;;  %p270_p2 = scmp.lt.s32.totalorder %s748_s20, 3 }
   0x5   : > { %s856_s21 = smov (%p29_p1, %s27_s21), 0  ;;  %p271_p3 = pnand %p668_p0, %p270_p2 }
   0x6   : > { %p334_p4 = scmp.lt.s32.totalorder (!%p271_p3), %s740_s18, 1  ;;  %s750_s12 = smov (!%p271_p3), 4  }
   0x7   : > { %274 = sbr.rel (%p271_p3) target bundleno = 344 (0x158), region = 40  ;;  %s751_s13 = smov (!%p271_p3), 8  }
   0xc   : > { %v443_v0 = vld [vmem:[%s850_s3 + $0x8] sm:$0xf]  ;;  %vm458_vm0 = vcmask 1043456   ;;  %s858_s18 = smov (!%p334_p4, %s740_s18), 1  ;;  %v442_v1 = vld [vmem:[%s850_s3] sm:$0xff]  ;;  %vm398_vm1 = vcmask 1040384  }
   0xd   : > { %693 = vmatprep.subr.msk.mxu0 %vm458_vm0, %v443_v0  ;;  %s806_s26 = sshll.u32 %s858_s18, 4  ;;  %vm412_vm2 = vcmask 1046528   ;;  %vm424_vm3 = vcmask 1045504   ;;  %vm436_vm4 = vcmask 31744   ;;  %vm439_vm5 = vcmask 64512  }
   0xe   : > { %694 = vmatpush3.msk.msra.mxu0 %vm458_vm0, %v443_v0  ;;  %s341_s29 = scalar_lea.vmem %s847_s0, %s806_s26  ;;  %s354_s7 = scalar_lea.vmem %s848_s1, %s806_s26  ;;  %vm451_vm6 = vcmask 97280   ;;  %v677_v32 = vld [vmem:[%s851_s4] ss:$0 sm:$0xff] }
   0xf   : > { %695 = vmatprep.subr.mxu0 %v442_v1  ;;  %v382_v2 = vld [vmem:[%s354_s7] sm:$0xff]  ;;  %v383_v3 = vld [vmem:[%s354_s7 + $0x8] sm:$0xff]  ;;  %s686_s8 = sadd.s32 8, %s806_s26  ;;  %s380_s18 = scalar_lea.vmem %s852_s5, %s806_s26 }
  0x10   : > { %696 = vmatpush3.msra.mxu0 %v442_v1  ;;  %v387_v4 = vld [vmem:[%s341_s29 + $0x7] sm:$0x1]  ;;  %v399_v6 = vrot.slane %v382_v2, 7  ;;  %v400_v7 = vrot.slane %v383_v3, 7  ;;  %s367_s11 = scalar_lea.vmem %s849_s2, %s686_s8 }
  0x11   : > { %v389_v5 = vmul.f32 0.0, %v387_v4  ;;  %v393_v8 = vld [vmem:[%s367_s11] sm:$0x1] }
  0x12   : > { %v401_v9 = vsel %vm398_vm1, %v399_v6, %v400_v7  ;;  %v395_v11 = vmul.f32 0.0, %v393_v8 }
  0x13   : > { %v408_v10 = vsel %vm398_vm1, %v389_v5, %v399_v6  ;;  %v414_v13 = vrot.slane %v401_v9, 1  ;;  %v426_v15 = vrot.slane %v401_v9, 2 }
  0x14   : > { %v413_v12 = vrot.slane %v408_v10, 1  ;;  %v425_v14 = vrot.slane %v408_v10, 2  ;;  %v406_v16 = vrot.slane %v395_v11, 7 }
  0x16   : > { %v415_v17 = vsel %vm412_vm2, %v413_v12, %v414_v13  ;;  %v427_v18 = vsel %vm424_vm3, %v425_v14, %v426_v15  ;;  %v409_v19 = vsel %vm398_vm1, %v400_v7, %v406_v16 }
  0x17   : > { %418 = vrot.lane.b32.xlu0 %v415_v17, %s750_s12  ;;  %430 = vrot.lane.b32.xlu1 %v427_v18, %s751_s13  ;;  %v416_v20 = vrot.slane %v409_v19, 1  ;;  %v428_v21 = vrot.slane %v409_v19, 2 }
  0x19   : > { %v417_v22 = vsel %vm412_vm2, %v414_v13, %v416_v20  ;;  %v429_v23 = vsel %vm424_vm3, %v426_v15, %v428_v21 }
  0x1b   : > { %420 = vrot.lane.b32.xlu0 %v417_v22, %s750_s12  ;;  %432 = vrot.lane.b32.xlu1 %v429_v23, %s751_s13 }
  0x89   : > { %v419_v24 = vpop.permute.xlu0 %418  ;;  %v431_v25 = vpop.permute.xlu1 %430 }
  0x8a   : > { %v437_v26 = vsel %vm436_vm4, %v408_v10, %v419_v24 }
  0x8b   : > { %v440_v27 = vsel %vm439_vm5, %v437_v26, %v431_v25 }
  0x8c   : > { %697 = vmatprep.mubr.msk.f32.mxu0 %vm451_vm6, %v440_v27 }
  0x8d   : > { %v421_v28 = vpop.permute.xlu0 %420  ;;  %v433_v29 = vpop.permute.xlu1 %432 }
  0x8e   : > { %v438_v30 = vsel %vm436_vm4, %v401_v9, %v421_v28 }
  0x8f   : > { %v441_v31 = vsel %vm439_vm5, %v438_v30, %v433_v29 }
  0x90   : > { %698 = vmatmul.mubr.msk.f32.vlgmr.msra.gmra.mxu0 %vm451_vm6, %v441_v31 }
 0x150   : > { %v699_v33 = vpop.f32.mrf.mxu0 }
 0x151   : > { %v534_v34 = vadd.f32 %v699_v33, %v677_v32 }
 0x152   : > { %v528_v35 = vpop.f32.mrf.mxu0 }
 0x153   : > { %v538_v36 = vmax.f32 %v534_v34, 0.0  ;;  %v529_v37 = vadd.f32 %v677_v32, %v528_v35 }
 0x155   : > { %540 = vst.msk [vmem:[%s380_s18 + $0x8] sm:$0xff] %vm439_vm5, %v538_v36  ;;  %v537_v38 = vmax.f32 %v529_v37, 0.0 }
 0x157   : > { %539 = vst.msk [vmem:[%s380_s18] sm:$0xff] %vm439_vm5, %v537_v38 }
 0x158 PF: > { %s15_s20 = sadd.s32 1, %s748_s20   ;;  %s853_s18 = smov %s744_s19 }
 0x159   : > { %p12_p5 = scmp.ge.s32.totalorder %s15_s20, 4   ;;  %s854_s19 = smov %s856_s21 }
 0x15b   :  { %14 = sbr.rel (!%p12_p5) target bundleno = 2 (0x2), region = 76 }

</bundles_post_ra>
